<compile_context>
chip_gen: v5e
topology: v5e:2x2
jax: 0.10.0
libtpu: 0.0.40
codegen_flags: <defaults>
</compile_context>

<pallas_src>
import jax
import jax.numpy as jnp
from jax.experimental import pallas as pl
from jax.experimental.pallas import tpu as pltpu

NEG_SLOPE = 0.01  # torch.nn.LeakyReLU default negative_slope


def _round_up(n, m):
    return ((n + m - 1) // m) * m


def _cdiv(a, b):
    return -(-a // b)


def _leaky_relu(x):
    return jnp.where(x > 0, x, NEG_SLOPE * x)


# ----------------------------------------------------------------------------
# Kernel
# ----------------------------------------------------------------------------
def actor_kernel(x_ref, w1_ref, b1_ref, w2_ref, b2_ref, w3_ref, bsb_ref, o_ref):
    # x tile: [TB, obs_dim] f32.  Weights are pre-cast to bf16 (MXU-native);
    # activations cast to bf16 only at the dot inputs, accumulate in f32.
    x = x_ref[...].astype(jnp.bfloat16)

    h1 = jnp.dot(x, w1_ref[...], preferred_element_type=jnp.float32) + b1_ref[...]
    h1 = _leaky_relu(h1)

    h2 = jnp.dot(h1.astype(jnp.bfloat16), w2_ref[...],
                 preferred_element_type=jnp.float32) + b2_ref[...]
    h2 = _leaky_relu(h2)

    # bsb_ref packs [b3; action_scale; action_bias] as rows of a (3, act_dim)
    # resident operand.
    h3 = jnp.dot(h2.astype(jnp.bfloat16), w3_ref[...],
                 preferred_element_type=jnp.float32) + bsb_ref[0:1, :]
    a = jnp.tanh(h3)

    # Direct (TB, act_dim) store — no lane padding, no wrapper slice.
    o_ref[...] = bsb_ref[1:2, :] * a + bsb_ref[2:3, :]


# ----------------------------------------------------------------------------
# One-time parameter preparation (hoisted out of the per-step forward path)
# ----------------------------------------------------------------------------
def prepare_params(params):
    """Cast matmul weights to bf16 and pack (b3, scale, bias) into one array.

    Call once; reuse the result for every forward call so no pad/convert XLA
    ops run on the per-env-step hot path."""
    w1, b1, w2, b2, w3, b3, scale, bias = params
    bsb = jnp.concatenate([b3, scale, bias], axis=0)  # (3, act_dim) f32
    return (w1.astype(jnp.bfloat16), b1.astype(jnp.float32),
            w2.astype(jnp.bfloat16), b2.astype(jnp.float32),
            w3.astype(jnp.bfloat16), bsb.astype(jnp.float32))


# ----------------------------------------------------------------------------
# Batch tiling
# ----------------------------------------------------------------------------
def _choose_tiling(B, tb_max=1024, split_threshold=512):
    """Balanced batch tiles.

    * small batch: one tile (per-grid-step overhead dominates)
    * large batch: even number of steps (both v7x TensorCores busy via
      dimension_semantics=("parallel",)), balanced so pad waste < 8 rows,
      TB capped at tb_max (VMEM use stays ~few MB, far under any limit).
    """
    B8 = _round_up(B, 8)
    if B8 < split_threshold:
        return B8, B8
    steps = max(2, _cdiv(B8, tb_max))
    if steps % 2:
        steps += 1
    TB = _round_up(_cdiv(B8, steps), 8)
    return TB, TB * steps


# ----------------------------------------------------------------------------
# Forward
# ----------------------------------------------------------------------------
def actor_forward(x, prepared, tb_max=1024):
    """x: [B, obs_dim] float32.  prepared: output of prepare_params().
    Returns [B, act_dim] float32."""
    w1, b1, w2, b2, w3, bsb = prepared
    B, obs_dim = x.shape
    H1 = w1.shape[1]
    H2 = w2.shape[1]
    act_dim = w3.shape[1]

    TB, B_pad = _choose_tiling(B, tb_max)
    if B_pad != B:
        x = jnp.pad(x, ((0, B_pad - B), (0, 0)))
    grid = (B_pad // TB,)

    def resident(shape):
        # Full-array block with a constant index_map: DMA'd into VMEM once and
        # kept resident across every grid step.
        return pl.BlockSpec(shape, lambda i: (0, 0))

    out = pl.pallas_call(
        actor_kernel,
        out_shape=jax.ShapeDtypeStruct((B_pad, act_dim), jnp.float32),
        grid=grid,
        in_specs=[
            pl.BlockSpec((TB, obs_dim), lambda i: (i, 0)),   # x: pipelined
            resident((obs_dim, H1)), resident((1, H1)),      # w1, b1
            resident((H1, H2)),      resident((1, H2)),      # w2, b2
            resident((H2, act_dim)),                         # w3
            resident((3, act_dim)),                          # [b3; scale; bias]
        ],
        out_specs=pl.BlockSpec((TB, act_dim), lambda i: (i, 0)),
        compiler_params=pltpu.CompilerParams(
            dimension_semantics=("parallel",),   # shard grid steps on v7x's 2 TCs
            vmem_limit_bytes=32 * 1024 * 1024,   # safe on v5e/v6e/v7x
        ),
    )(x, w1, b1, w2, b2, w3, bsb)

    return out if B_pad == B else out[:B]


# ----------------------------------------------------------------------------
# Param init & references
# ----------------------------------------------------------------------------
def init_actor_params(key, obs_dim, act_dim, low, high):
    """Deterministic init mimicking nn.Linear's U(-1/sqrt(fan_in), 1/sqrt(fan_in))."""
    ks = jax.random.split(key, 6)

    def linear(kw, kb, fan_in, fan_out):
        bound = 1.0 / jnp.sqrt(jnp.asarray(fan_in, jnp.float32))
        w = jax.random.uniform(kw, (fan_in, fan_out), jnp.float32, -bound, bound)
        b = jax.random.uniform(kb, (1, fan_out), jnp.float32, -bound, bound)
        return w, b

    w1, b1 = linear(ks[0], ks[1], obs_dim, 256)
    w2, b2 = linear(ks[2], ks[3], 256, 128)
    w3, b3 = linear(ks[4], ks[5], 128, act_dim)

    action_scale = ((high - low) / 2.0).reshape(1, act_dim).astype(jnp.float32)
    action_bias = ((high + low) / 2.0).reshape(1, act_dim).astype(jnp.float32)
    return (w1, b1, w2, b2, w3, b3, action_scale, action_bias)


def actor_reference_f32(x, params):
    """Exact f32 reference matching the PyTorch module semantics."""
    w1, b1, w2, b2, w3, b3, scale, bias = params
    h = jax.nn.leaky_relu(x @ w1 + b1, NEG_SLOPE)
    h = jax.nn.leaky_relu(h @ w2 + b2, NEG_SLOPE)
    a = jnp.tanh(h @ w3 + b3)
    return scale * a + bias


def actor_reference_bf16(x, params):
    """Reference using the same bf16-operand / f32-accumulate dot strategy."""
    w1, b1, w2, b2, w3, b3, scale, bias = params
    bf = jnp.bfloat16
    h = jnp.dot(x.astype(bf), w1.astype(bf), preferred_element_type=jnp.float32) + b1
    h = jax.nn.leaky_relu(h, NEG_SLOPE)
    h = jnp.dot(h.astype(bf), w2.astype(bf), preferred_element_type=jnp.float32) + b2
    h = jax.nn.leaky_relu(h, NEG_SLOPE)
    a = jnp.tanh(jnp.dot(h.astype(bf), w3.astype(bf),
                         preferred_element_type=jnp.float32) + b3)
    return scale * a + bias


# ----------------------------------------------------------------------------
if __name__ == "__main__":
    key = jax.random.PRNGKey(0)
    k_param, k_x, k_big, k_rag = jax.random.split(key, 4)

    batch = 2
    obs_dim = 8   # small continuous-control observation space
    act_dim = 4   # small continuous action space

    # Synthetic action-space bounds (deterministic).
    low = jnp.full((act_dim,), -1.0, jnp.float32)
    high = jnp.full((act_dim,), 2.0, jnp.float32)

    params = init_actor_params(k_param, obs_dim, act_dim, low, high)
    prepared = prepare_params(params)        # one-time: bf16 cast + packing
    fwd = jax.jit(actor_forward)

    # --- tiny batch (spec shapes) --------------------------------------------
    x = jax.random.normal(k_x, (batch, obs_dim), jnp.float32)
    out = jax.block_until_ready(fwd(x, prepared))
    assert out.shape == (batch, act_dim)
    assert jnp.allclose(out, actor_reference_bf16(x, params), atol=2e-3, rtol=2e-3), \
        "mismatch vs bf16-matched reference"
    assert jnp.allclose(out, actor_reference_f32(x, params), atol=5e-2, rtol=5e-2), \
        "mismatch vs f32 reference"

    # --- larger batch: multi-step grid, resident weights ----------------------
    xb = jax.random.normal(k_big, (1024, obs_dim), jnp.float32)
    outb = jax.block_until_ready(fwd(xb, prepared))
    assert outb.shape == (1024, act_dim)
    assert jnp.allclose(outb, actor_reference_bf16(xb, params), atol=2e-3, rtol=2e-3), \
        "mismatch vs bf16-matched reference (batched)"

    # --- ragged batch: balanced tiles, minimal pad waste ----------------------
    xr = jax.random.normal(k_rag, (520, obs_dim), jnp.float32)
    outr = jax.block_until_ready(fwd(xr, prepared))
    assert outr.shape == (520, act_dim)
    assert jnp.allclose(outr, actor_reference_bf16(xr, params), atol=2e-3, rtol=2e-3), \
        "mismatch vs bf16-matched reference (ragged batch)"

    print("KERNEL_OK")
</pallas_src>

<mosaic_0001>
module attributes {stable_mosaic.version = 11 : i64} {
  func.func @actor_kernel(%arg0: i32, %arg1: memref<8x8xf32, #tpu.memory_space<vmem>>, %arg2: memref<8x256xbf16, #tpu.memory_space<vmem>>, %arg3: memref<1x256xf32, #tpu.memory_space<vmem>>, %arg4: memref<256x128xbf16, #tpu.memory_space<vmem>>, %arg5: memref<1x128xf32, #tpu.memory_space<vmem>>, %arg6: memref<128x4xbf16, #tpu.memory_space<vmem>>, %arg7: memref<3x4xf32, #tpu.memory_space<vmem>>, %arg8: memref<8x4xf32, #tpu.memory_space<vmem>>) attributes {dimension_semantics = [#tpu.dimension_semantics<parallel>], iteration_bounds = array<i64: 1>, scalar_prefetch = 0 : i64, scratch_operands = 0 : i64, tpu.core_type = #tpu.core_type<tc>, window_params = [{transform_indices = @transform_0, window_bounds = array<i64: 8, 8>}, {pipeline_mode = #tpu.pipeline_mode<synchronous>, transform_indices = @transform_1, window_bounds = array<i64: 8, 256>}, {pipeline_mode = #tpu.pipeline_mode<synchronous>, transform_indices = @transform_2, window_bounds = array<i64: 1, 256>}, {pipeline_mode = #tpu.pipeline_mode<synchronous>, transform_indices = @transform_3, window_bounds = array<i64: 256, 128>}, {pipeline_mode = #tpu.pipeline_mode<synchronous>, transform_indices = @transform_4, window_bounds = array<i64: 1, 128>}, {pipeline_mode = #tpu.pipeline_mode<synchronous>, transform_indices = @transform_5, window_bounds = array<i64: 128, 4>}, {pipeline_mode = #tpu.pipeline_mode<synchronous>, transform_indices = @transform_6, window_bounds = array<i64: 3, 4>}, {transform_indices = @transform_7, window_bounds = array<i64: 8, 4>}]} {
    %c0 = arith.constant 0 : index
    %c0_0 = arith.constant 0 : index
    %0 = vector.load %arg1[%c0, %c0_0] : memref<8x8xf32, #tpu.memory_space<vmem>>, vector<8x8xf32>
    %1 = arith.truncf %0 : vector<8x8xf32> to vector<8x8xbf16>
    %c0_1 = arith.constant 0 : index
    %c0_2 = arith.constant 0 : index
    %2 = vector.load %arg2[%c0_1, %c0_2] : memref<8x256xbf16, #tpu.memory_space<vmem>>, vector<8x256xbf16>
    %cst = arith.constant dense<0.000000e+00> : vector<8x256xf32>
    %3 = tpu.matmul %1, %2, %cst {dimension_numbers = #tpu.dot_dimension_numbers<[1], [0], [0], [1], [0, 0, 1, 1], [], []>} : vector<8x8xbf16>, vector<8x256xbf16>, vector<8x256xf32> -> vector<8x256xf32>
    %c0_3 = arith.constant 0 : index
    %c0_4 = arith.constant 0 : index
    %4 = vector.load %arg3[%c0_3, %c0_4] : memref<1x256xf32, #tpu.memory_space<vmem>>, vector<1x256xf32>
    %5 = vector.broadcast %4 : vector<1x256xf32> to vector<8x256xf32>
    %6 = arith.addf %3, %5 : vector<8x256xf32>
    %cst_5 = arith.constant 0.000000e+00 : f32
    %7 = vector.broadcast %cst_5 : f32 to vector<8x256xf32>
    %8 = arith.cmpf ogt, %6, %7 : vector<8x256xf32>
    %cst_6 = arith.constant 0.00999999977 : f32
    %9 = vector.broadcast %cst_6 : f32 to vector<8x256xf32>
    %10 = arith.mulf %9, %6 : vector<8x256xf32>
    %11 = arith.select %8, %6, %10 : vector<8x256xi1>, vector<8x256xf32>
    %12 = arith.truncf %11 : vector<8x256xf32> to vector<8x256xbf16>
    %c0_7 = arith.constant 0 : index
    %c0_8 = arith.constant 0 : index
    %13 = vector.load %arg4[%c0_7, %c0_8] : memref<256x128xbf16, #tpu.memory_space<vmem>>, vector<256x128xbf16>
    %cst_9 = arith.constant dense<0.000000e+00> : vector<8x128xf32>
    %14 = tpu.matmul %12, %13, %cst_9 {dimension_numbers = #tpu.dot_dimension_numbers<[1], [0], [0], [1], [0, 0, 1, 1], [], []>} : vector<8x256xbf16>, vector<256x128xbf16>, vector<8x128xf32> -> vector<8x128xf32>
    %c0_10 = arith.constant 0 : index
    %c0_11 = arith.constant 0 : index
    %15 = vector.load %arg5[%c0_10, %c0_11] : memref<1x128xf32, #tpu.memory_space<vmem>>, vector<1x128xf32>
    %16 = vector.broadcast %15 : vector<1x128xf32> to vector<8x128xf32>
    %17 = arith.addf %14, %16 : vector<8x128xf32>
    %cst_12 = arith.constant 0.000000e+00 : f32
    %18 = vector.broadcast %cst_12 : f32 to vector<8x128xf32>
    %19 = arith.cmpf ogt, %17, %18 : vector<8x128xf32>
    %cst_13 = arith.constant 0.00999999977 : f32
    %20 = vector.broadcast %cst_13 : f32 to vector<8x128xf32>
    %21 = arith.mulf %20, %17 : vector<8x128xf32>
    %22 = arith.select %19, %17, %21 : vector<8x128xi1>, vector<8x128xf32>
    %23 = arith.truncf %22 : vector<8x128xf32> to vector<8x128xbf16>
    %c0_14 = arith.constant 0 : index
    %c0_15 = arith.constant 0 : index
    %24 = vector.load %arg6[%c0_14, %c0_15] : memref<128x4xbf16, #tpu.memory_space<vmem>>, vector<128x4xbf16>
    %cst_16 = arith.constant dense<0.000000e+00> : vector<8x4xf32>
    %25 = tpu.matmul %23, %24, %cst_16 {dimension_numbers = #tpu.dot_dimension_numbers<[1], [0], [0], [1], [0, 0, 1, 1], [], []>} : vector<8x128xbf16>, vector<128x4xbf16>, vector<8x4xf32> -> vector<8x4xf32>
    %c0_17 = arith.constant 0 : index
    %c0_18 = arith.constant 0 : index
    %26 = vector.load %arg7[%c0_17, %c0_18] : memref<3x4xf32, #tpu.memory_space<vmem>>, vector<1x4xf32>
    %27 = vector.broadcast %26 : vector<1x4xf32> to vector<8x4xf32>
    %28 = arith.addf %25, %27 : vector<8x4xf32>
    %29 = math.tanh %28 : vector<8x4xf32>
    %c1 = arith.constant 1 : index
    %c0_19 = arith.constant 0 : index
    %30 = vector.load %arg7[%c1, %c0_19] : memref<3x4xf32, #tpu.memory_space<vmem>>, vector<1x4xf32>
    %31 = vector.broadcast %30 : vector<1x4xf32> to vector<8x4xf32>
    %32 = arith.mulf %31, %29 : vector<8x4xf32>
    %c2 = arith.constant 2 : index
    %c0_20 = arith.constant 0 : index
    %33 = vector.load %arg7[%c2, %c0_20] : memref<3x4xf32, #tpu.memory_space<vmem>>, vector<1x4xf32>
    %34 = vector.broadcast %33 : vector<1x4xf32> to vector<8x4xf32>
    %35 = arith.addf %32, %34 : vector<8x4xf32>
    %c0_21 = arith.constant 0 : index
    %c0_22 = arith.constant 0 : index
    %36 = vector.load %arg8[%c0_21, %c0_22] : memref<8x4xf32, #tpu.memory_space<vmem>>, vector<8x4xf32>
    tpu.vector_store %arg8[%c0_21, %c0_22], %35 {strides = array<i32>} : memref<8x4xf32, #tpu.memory_space<vmem>>, vector<8x4xf32>,
    return
  }
  func.func @transform_0(%arg0: i32) -> (i32, i32) {
    %c0_i32 = arith.constant 0 : i32
    %c0_i32_0 = arith.constant 0 : i32
    return %arg0, %c0_i32 : i32, i32
  }
  func.func @transform_1(%arg0: i32) -> (i32, i32) {
    %c0_i32 = arith.constant 0 : i32
    %c0_i32_0 = arith.constant 0 : i32
    %c0_i32_1 = arith.constant 0 : i32
    return %c0_i32, %c0_i32_0 : i32, i32
  }
  func.func @transform_2(%arg0: i32) -> (i32, i32) {
    %c0_i32 = arith.constant 0 : i32
    %c0_i32_0 = arith.constant 0 : i32
    %c0_i32_1 = arith.constant 0 : i32
    return %c0_i32, %c0_i32_0 : i32, i32
  }
  func.func @transform_3(%arg0: i32) -> (i32, i32) {
    %c0_i32 = arith.constant 0 : i32
    %c0_i32_0 = arith.constant 0 : i32
    %c0_i32_1 = arith.constant 0 : i32
    return %c0_i32, %c0_i32_0 : i32, i32
  }
  func.func @transform_4(%arg0: i32) -> (i32, i32) {
    %c0_i32 = arith.constant 0 : i32
    %c0_i32_0 = arith.constant 0 : i32
    %c0_i32_1 = arith.constant 0 : i32
    return %c0_i32, %c0_i32_0 : i32, i32
  }
  func.func @transform_5(%arg0: i32) -> (i32, i32) {
    %c0_i32 = arith.constant 0 : i32
    %c0_i32_0 = arith.constant 0 : i32
    %c0_i32_1 = arith.constant 0 : i32
    return %c0_i32, %c0_i32_0 : i32, i32
  }
  func.func @transform_6(%arg0: i32) -> (i32, i32) {
    %c0_i32 = arith.constant 0 : i32
    %c0_i32_0 = arith.constant 0 : i32
    %c0_i32_1 = arith.constant 0 : i32
    return %c0_i32, %c0_i32_0 : i32, i32
  }
  func.func @transform_7(%arg0: i32) -> (i32, i32) {
    %c0_i32 = arith.constant 0 : i32
    %c0_i32_0 = arith.constant 0 : i32
    return %arg0, %c0_i32 : i32, i32
  }
}

</mosaic_0001>

<bundles_post_ra>
// kernel: actor_forward.1
= control target key start
LH: loop header
LB: loop body
LE: loop exit
PB: predicated region body
PF: predicated region fallthrough
CT: control target
= control target key end

     0   :  { %12 = vsyncpa [#allocation3], 0  ;;  %s514_s27 = smov [#allocation2]   ;;  %s515_s29 = smov 64   ;;  %s608_s0 = inlined_call_operand.vmem [shape: f32[8,8], index: 0, kind: input, shape index: {}]   ;;  %s609_s1 = inlined_call_operand.vmem [shape: bf16[8,256], index: 1, kind: input, shape index: {}]   ;;  %s610_s2 = inlined_call_operand.vmem [shape: f32[1,256], index: 2, kind: input, shape index: {}]   ;;  %s611_s3 = inlined_call_operand.hbm [shape: bf16[256,128], index: 3, kind: input, shape index: {}]   ;;  %s612_s4 = inlined_call_operand.vmem [shape: f32[1,128], index: 4, kind: input, shape index: {}]   ;;  %s613_s5 = inlined_call_operand.vmem [shape: bf16[128,4], index: 5, kind: input, shape index: {}]   ;;  %s614_s6 = inlined_call_operand.vmem [shape: f32[3,4], index: 6, kind: input, shape index: {}]   ;;  %s615_s7 = inlined_call_operand.vmem [shape: f32[8,4], index: 7, kind: output, shape index: {}]  }
   0x1   :  { %s23_s26 = sshll.u32 %s611_s3, 4  ;;  %s25_s28 = sshll.u32 %s514_s27, 4  ;;  %s24_s26 = int_to_ptr.hbm [resolvable:$true] %s23_s26  ;;  %s26_s28 = int_to_ptr.vmem [resolvable:$true] %s25_s28 }
   0x2   :  { %s516_s30 = smov 4  }
   0x3   :  { %31 = dma.hbm_to_vmem [thread:$0]  %s24_s26, 2048, %s26_s28, [#allocation3], %s515_s29, %s515_s29, %s516_s30  }
   0x4   :  { %512 = dma.done.wait [#allocation3], 2048  }
   0x5   :  { %513 = vsyncadd [#allocation3], 4294965248  ;;  %v45_v0 = vld [vmem:[%s609_s1] sm:$0xff]  ;;  %v462_v1 = vld [vmem:[#allocation2 + $0x38] sm:$0xff]  ;;  %vm61_vm0 = vcmask 1043456   ;;  %vm57_vm1 = vcmask 64512  }
   0x6   :  { %v53_v2 = vunpack.c.l.b16 %v45_v0  ;;  %v54_v3 = vunpack.c.h.b16 %v45_v0  ;;  %v43_v4 = vld [vmem:[%s608_s0] sm:$0xff]  ;;  %234 = vmatpush.bf16.msra.mxu2 %v462_v1  ;;  %v461_v5 = vld [vmem:[#allocation2 + $0x30] sm:$0xff]  ;;  %v470_v6 = vld [vmem:[#allocation2 + $0x78] sm:$0xff]  ;;  %vm350_vm5 = vcmask 31744  }
   0x7   :  { %247 = vmatpush.bf16.msra.mxu3 %v470_v6  ;;  %v469_v9 = vld [vmem:[#allocation2 + $0x70] sm:$0xff]  ;;  %v44_v11 = vpack.c.bf16 %v43_v4, %v43_v4  ;;  %v460_v13 = vld [vmem:[#allocation2 + $0x28] sm:$0xff]  ;;  %v459_v14 = vld [vmem:[#allocation2 + $0x20] sm:$0xff] }
   0x8   :  { %v55_v7 = vpack.c.b16 %v53_v2, %v53_v2  ;;  %v56_v8 = vpack.c.b16 %v54_v3, %v54_v3  ;;  %v458_v15 = vld [vmem:[#allocation2 + $0x18] sm:$0xff]  ;;  %v457_v16 = vld [vmem:[#allocation2 + $0x10] sm:$0xff]  ;;  %v456_v17 = vld [vmem:[#allocation2 + $0x8] sm:$0xff] }
   0x9   :  { %v468_v18 = vld [vmem:[#allocation2 + $0x68] sm:$0xff]  ;;  %v455_v19 = vld [vmem:[#allocation2] sm:$0xff]  ;;  %v466_v21 = vld [vmem:[#allocation2 + $0x58] sm:$0xff] }
   0xa   :  { %v63_v10 = vsel %vm61_vm0, %v55_v7, 0  ;;  %v66_v12 = vsel %vm61_vm0, %v56_v8, 0  ;;  %235 = vmatpush.bf16.msra.mxu2 %v461_v5  ;;  %v467_v20 = vld [vmem:[#allocation2 + $0x60] sm:$0xff]  ;;  %v465_v22 = vld [vmem:[#allocation2 + $0x50] sm:$0xff]  ;;  %v464_v23 = vld [vmem:[#allocation2 + $0x48] sm:$0xff] }
   0xb   :  { %75 = vmatpush.bf16.msra.mxu1 %v63_v10  ;;  %248 = vmatpush.bf16.msra.mxu3 %v469_v9  ;;  %v463_v24 = vld [vmem:[#allocation2 + $0x40] sm:$0xff]  ;;  %v478_v25 = vld [vmem:[%s613_s5 + $0x38] sm:$0xff]  ;;  %v477_v27 = vld [vmem:[%s613_s5 + $0x30] sm:$0xff] }
   0xc   :  { %v46_v26 = vld [vmem:[%s610_s2] sm:$0x3]  ;;  %330 = vmatpush.bf16.msra.mxu0 %v478_v25  ;;  %v476_v42 = vld [vmem:[%s613_s5 + $0x28] sm:$0xff]  ;;  %v474_v44 = vld [vmem:[%s613_s5 + $0x18] sm:$0xff] }
   0xd   :  { %v48_v28 = vperm.slane %v46_v26, 0  ;;  %v49_v35 = vperm.slane %v46_v26, 1  ;;  %v475_v43 = vld [vmem:[%s613_s5 + $0x20] sm:$0xff]  ;;  %v473_v45 = vld [vmem:[%s613_s5 + $0x10] sm:$0xff]  ;;  %v472_v46 = vld [vmem:[%s613_s5 + $0x8] sm:$0xff] }
   0xe   :  { %357 = vmatmul.msk.bf16.vlgmr.msra.gmra.mxu1 %vm57_vm1, %v44_v11  ;;  %236 = vmatpush.bf16.msra.mxu2 %v460_v13  ;;  %v471_v47 = vld [vmem:[%s613_s5] sm:$0xff] }
   0xf   :  { %88 = vmatpush.bf16.msrb.mxu1 %v66_v12  ;;  %249 = vmatpush.bf16.msra.mxu3 %v468_v18  ;;  %v482_v50 = vld [vmem:[%s612_s4] ss:$0 sm:$0xff]  ;;  %v484_v61 = vld [vmem:[%s614_s6 + $0x1] ss:$0 sm:$0xff]  ;;  %v485_v62 = vld [vmem:[%s614_s6 + $0x2] ss:$0 sm:$0xff] }
  0x10   :  { %331 = vmatpush.bf16.msra.mxu0 %v477_v27  ;;  %v483_v58 = vld [vmem:[%s614_s6] ss:$0 sm:$0xff] }
  0x12   :  { %237 = vmatpush.bf16.msra.mxu2 %v459_v14 }
  0x13   :  { %250 = vmatpush.bf16.msra.mxu3 %v467_v20 }
  0x14   :  { %332 = vmatpush.bf16.msra.mxu0 %v476_v42 }
  0x16   :  { %238 = vmatpush.bf16.msra.mxu2 %v458_v15 }
  0x17   :  { %251 = vmatpush.bf16.msra.mxu3 %v466_v21 }
  0x18   :  { %333 = vmatpush.bf16.msra.mxu0 %v475_v43 }
  0x1a   :  { %239 = vmatpush.bf16.msra.mxu2 %v457_v16 }
  0x1b   :  { %252 = vmatpush.bf16.msra.mxu3 %v465_v22 }
  0x1c   :  { %334 = vmatpush.bf16.msra.mxu0 %v474_v44 }
  0x1e   :  { %358 = vmatmul.msk.bf16.vlgmr.msrb.gmra.mxu1 %vm57_vm1, %v44_v11  ;;  %240 = vmatpush.bf16.msra.mxu2 %v456_v17 }
  0x1f   :  { %253 = vmatpush.bf16.msra.mxu3 %v464_v23 }
  0x20   :  { %335 = vmatpush.bf16.msra.mxu0 %v473_v45 }
  0x22   :  { %241 = vmatpush.bf16.msra.mxu2 %v455_v19 }
  0x23   :  { %254 = vmatpush.bf16.msra.mxu3 %v463_v24 }
  0x24   :  { %336 = vmatpush.bf16.msra.mxu0 %v472_v46 }
  0x28   :  { %337 = vmatpush.bf16.msra.mxu0 %v471_v47 }
  0x8b   :  { %v77_v29 = vpop.f32.mrf.mxu1 }
  0x8c   :  { %v78_v30 = vadd.f32 %v77_v29, %v48_v28 }
  0x8e   :  { %v96_v31 = vmul.f32 0.01, %v78_v30  ;;  %vm94_vm2 = vcmp.gt.f32.partialorder %v78_v30, 0.0 }
  0x90   :  { %v98_v32 = vsel %vm94_vm2, %v78_v30, %v96_v31 }
  0x91   :  { %v100_v33 = vpack.c.bf16 %v98_v32, %v98_v32 }
  0x93   :  { %v79_v34 = vpop.f32.mrf.mxu1  ;;  %242 = vmatmul.bf16.vlgmr.msra.gmra.mxu2 %v100_v33 }
  0x9b   :  { %v90_v36 = vpop.f32.mrf.mxu1 }
  0x9c   :  { %v91_v37 = vadd.f32 %v90_v36, %v49_v35 }
  0x9e   :  { %v97_v38 = vmul.f32 0.01, %v91_v37  ;;  %vm95_vm3 = vcmp.gt.f32.partialorder %v91_v37, 0.0 }
  0xa0   :  { %v99_v39 = vsel %vm95_vm3, %v91_v37, %v97_v38 }
  0xa1   :  { %v101_v40 = vpack.c.bf16 %v99_v39, %v99_v39 }
  0xa3   :  { %v92_v41 = vpop.f32.mrf.mxu1  ;;  %255 = vmatmul.bf16.vlgmr.msra.gmra.mxu3 %v101_v40 }
 0x116   :  { %v243_v48 = vpop.f32.mrf.mxu2 }
 0x117   :  { %v244_v51 = vadd.f32 %v482_v50, %v243_v48 }
 0x11e   :  { %v245_v49 = vpop.f32.mrf.mxu2 }
 0x126   :  { %v256_v52 = vpop.f32.mrf.mxu3 }
 0x127   :  { %v257_v53 = vadd.f32 %v256_v52, %v244_v51 }
 0x129   :  { %v261_v54 = vmul.f32 0.01, %v257_v53  ;;  %vm260_vm4 = vcmp.gt.f32.partialorder %v257_v53, 0.0 }
 0x12b   :  { %v262_v55 = vsel %vm260_vm4, %v257_v53, %v261_v54 }
 0x12c   :  { %v263_v56 = vpack.c.bf16 %v262_v55, %v262_v55 }
 0x12e   :  { %v258_v57 = vpop.f32.mrf.mxu3  ;;  %338 = vmatmul.bf16.vlgmr.msra.gmra.mxu0 %v263_v56 }
 0x1ab   :  { %v339_v59 = vpop.f32.mrf.mxu0 }
 0x1ac   :  { %v340_v60 = vadd.f32 %v483_v58, %v339_v59 }
 0x1ae   :  { %486 = vtanh.f32 %v340_v60 }
 0x1b3   :  { %v341_v63 = vpop.f32.mrf.mxu0 }
 0x1b4   :  { %v487_v0 = vpop.eup %486 }
 0x1b5   :  { %v346_v1 = vmul.f32 %v487_v0, %v484_v61 }
 0x1b7   :  { %v349_v2 = vadd.f32 %v485_v62, %v346_v1 }
 0x1b9   :  { %351 = vst.msk [vmem:[%s615_s7] sm:$0xff] %vm350_vm5, %v349_v2 }
 0x1ba   :  { %356 = vsyncpa [#allocation3], 1 }

</bundles_post_ra>
